<compile_context>
chip_gen: v7x
topology: tpu7x:2x2x1
jax: 0.10.0
libtpu: 0.0.40
codegen_flags: <defaults>
</compile_context>

<pallas_src>
import jax
import jax.numpy as jnp
from jax import lax
from jax.experimental import pallas as pl
from jax.experimental.pallas import tpu as pltpu

EMBED_DIM = 44
EMBED_PAD = 64          # zero-padded embed width (multiple of bf16 sublane pack 16)
HIDDEN_DIM = 128
N_LAYERS = 6
LN_EPS = 1e-5


def resnet_kernel(x_ref, w1_ref, w2_ref, bh_ref, be_ref, out_ref):
    """One batch tile through all residual layers + final projection.

    x_ref  : (TB, Ep)        f32   activations (embed zero-padded to Ep)
    w1_ref : (L, Ep, H)      bf16  Linear(embed -> hidden) weights
    w2_ref : (L, H, Ep)      bf16  Linear(hidden -> embed) weights
    bh_ref : (L, 3, H)       f32   [b1, ln_gamma, ln_beta] per layer
    be_ref : (L+1, Ep)       f32   rows 0..L-1 = b2, row L = final wf
    out_ref: (TB, 1)         f32   final projection (bias added in wrapper)
    """
    x = x_ref[...].astype(jnp.float32)                       # (TB, Ep)

    n_layers = w1_ref.shape[0]
    hidden = w1_ref.shape[2]
    inv_h = 1.0 / hidden

    # Static (fully unrolled) layer loop — layers are serially dependent.
    for i in range(n_layers):
        lp = bh_ref[i]                                        # (3, H) f32
        b1 = lp[0:1, :]
        gamma = lp[1:2, :]
        beta = lp[2:3, :]
        b2 = be_ref[i:i + 1, :]                               # (1, Ep)

        # Linear(embed -> hidden): bf16 MXU operands, f32 accumulation.
        h = jnp.dot(x.astype(jnp.bfloat16), w1_ref[i],
                    preferred_element_type=jnp.float32) + b1  # (TB, H)

        # LayerNorm over hidden dim — single-pass stats, variance clamped >= 0.
        mean = jnp.sum(h, axis=-1, keepdims=True) * inv_h
        meansq = jnp.sum(h * h, axis=-1, keepdims=True) * inv_h
        var = jnp.maximum(meansq - mean * mean, 0.0)
        h = (h - mean) * lax.rsqrt(var + LN_EPS)
        h = h * gamma + beta

        # ReLU
        h = jnp.maximum(h, 0.0)

        # Dropout(p=0.1): identity in eval mode.
        # TODO(synk): training-mode dropout (stochastic mask) not implemented.

        # Linear(hidden -> embed): bf16 MXU operands, f32 accumulation.
        y = jnp.dot(h.astype(jnp.bfloat16), w2_ref[i],
                    preferred_element_type=jnp.float32) + b2  # (TB, Ep)

        # Residual: x = (layer(x) + x) * 0.5
        x = (y + x) * 0.5

    # Final Linear(embed -> 1): VPU multiply + lane reduction (no N=1 MXU push).
    wf = be_ref[n_layers:n_layers + 1, :]                     # (1, Ep)
    out_ref[...] = jnp.sum(x * wf, axis=-1, keepdims=True)


def _pack_params(params, embed_pad=EMBED_PAD):
    """Zero-pad embed axis to `embed_pad` and pack the small per-layer vectors."""
    (w1, b1, g, beta, w2, b2, wf, bf) = params
    L, E, H = w1.shape
    pad_e = embed_pad - E
    w1p = jnp.pad(w1, ((0, 0), (0, pad_e), (0, 0)))           # (L, Ep, H) bf16
    w2p = jnp.pad(w2, ((0, 0), (0, 0), (0, pad_e)))           # (L, H, Ep) bf16
    bh = jnp.stack([b1, g, beta], axis=1)                     # (L, 3, H) f32
    b2p = jnp.pad(b2, ((0, 0), (0, pad_e)))                   # (L, Ep)
    wfp = jnp.pad(wf, ((0, 0), (0, pad_e)))                   # (1, Ep)
    be = jnp.concatenate([b2p, wfp], axis=0)                  # (L+1, Ep)
    return w1p, w2p, bh, be, bf


def resnet_forward(x, params, *, tile_b=256):
    w1p, w2p, bh, be, bf = _pack_params(params)
    B, E = x.shape
    L, Ep, H = w1p.shape

    # Batch tile: multiple of 8 sublanes, up to tile_b rows per grid step.
    tb = min(tile_b, pl.cdiv(B, 8) * 8)
    b_pad = pl.cdiv(B, tb) * tb
    x_pad = jnp.pad(x.astype(jnp.float32), ((0, b_pad - B), (0, Ep - E)))

    out = pl.pallas_call(
        resnet_kernel,
        out_shape=jax.ShapeDtypeStruct((b_pad, 1), jnp.float32),
        grid_spec=pltpu.PrefetchScalarGridSpec(
            num_scalar_prefetch=0,
            grid=(b_pad // tb,),
            in_specs=[
                pl.BlockSpec((tb, Ep), lambda b: (b, 0)),        # x: per-tile
                pl.BlockSpec((L, Ep, H), lambda b: (0, 0, 0)),   # weights: fetched once
                pl.BlockSpec((L, H, Ep), lambda b: (0, 0, 0)),
                pl.BlockSpec((L, 3, H), lambda b: (0, 0, 0)),
                pl.BlockSpec((L + 1, Ep), lambda b: (0, 0)),
            ],
            out_specs=pl.BlockSpec((tb, 1), lambda b: (b, 0)),
        ),
        compiler_params=pltpu.CompilerParams(
            dimension_semantics=("parallel",)),
    )(x_pad, w1p, w2p, bh, be)

    # Final bias folded outside the kernel.
    return out[:B] + bf


def xavier_uniform(key, fan_in, fan_out, shape):
    bound = (6.0 / (fan_in + fan_out)) ** 0.5
    return jax.random.uniform(key, shape, jnp.float32, -bound, bound)


def init_params(key, embed_dim=EMBED_DIM, hidden_dim=HIDDEN_DIM, n_layers=N_LAYERS):
    keys = jax.random.split(key, 2 * n_layers + 1)
    w1 = jnp.stack([xavier_uniform(keys[2 * i], embed_dim, hidden_dim,
                                   (embed_dim, hidden_dim))
                    for i in range(n_layers)]).astype(jnp.bfloat16)  # (L, E, H)
    w2 = jnp.stack([xavier_uniform(keys[2 * i + 1], hidden_dim, embed_dim,
                                   (hidden_dim, embed_dim))
                    for i in range(n_layers)]).astype(jnp.bfloat16)  # (L, H, E)
    b1 = jnp.zeros((n_layers, hidden_dim), jnp.float32)
    b2 = jnp.zeros((n_layers, embed_dim), jnp.float32)
    g = jnp.ones((n_layers, hidden_dim), jnp.float32)                # LN weight
    beta = jnp.zeros((n_layers, hidden_dim), jnp.float32)            # LN bias
    wf = xavier_uniform(keys[-1], embed_dim, 1, (1, embed_dim))      # final Linear (row vec)
    bf = jnp.zeros((1, 1), jnp.float32)
    return (w1, b1, g, beta, w2, b2, wf, bf)


def resnet_reference(x, params):
    """Pure-JAX reference (eval mode) with the same bf16-weight / f32-accumulate
    matmul recipe as the kernel."""
    (w1, b1, g, beta, w2, b2, wf, bf) = params
    x = x.astype(jnp.float32)
    for i in range(w1.shape[0]):
        h = jnp.dot(x.astype(jnp.bfloat16), w1[i],
                    preferred_element_type=jnp.float32) + b1[i]
        mean = jnp.mean(h, axis=-1, keepdims=True)
        var = jnp.mean((h - mean) ** 2, axis=-1, keepdims=True)
        h = (h - mean) / jnp.sqrt(var + LN_EPS) * g[i] + beta[i]
        h = jnp.maximum(h, 0.0)
        y = jnp.dot(h.astype(jnp.bfloat16), w2[i],
                    preferred_element_type=jnp.float32) + b2[i]
        x = (y + x) * 0.5
    return jnp.sum(x * wf, axis=-1, keepdims=True) + bf


if __name__ == "__main__":
    key = jax.random.PRNGKey(0)
    k_x, k_x2, k_p = jax.random.split(key, 3)
    params = init_params(k_p)

    # Small batch (single tile path).
    B1 = 8
    x1 = jax.random.normal(k_x, (B1, EMBED_DIM), jnp.float32)
    out1 = jax.block_until_ready(resnet_forward(x1, params))
    ref1 = jax.block_until_ready(resnet_reference(x1, params))
    assert out1.shape == (B1, 1), out1.shape
    assert jnp.allclose(out1, ref1, atol=2e-3, rtol=2e-3), \
        f"max abs err {jnp.max(jnp.abs(out1 - ref1))}"

    # Larger, non-multiple-of-tile batch (multi-tile grid + batch padding path).
    B2 = 300
    x2 = jax.random.normal(k_x2, (B2, EMBED_DIM), jnp.float32)
    out2 = jax.block_until_ready(resnet_forward(x2, params))
    ref2 = jax.block_until_ready(resnet_reference(x2, params))
    assert out2.shape == (B2, 1), out2.shape
    assert jnp.allclose(out2, ref2, atol=2e-3, rtol=2e-3), \
        f"max abs err {jnp.max(jnp.abs(out2 - ref2))}"

    print("KERNEL_OK")
</pallas_src>

<mosaic_0001>
module attributes {stable_mosaic.version = 11 : i64} {
  func.func @resnet_kernel(%arg0: i32, %arg1: memref<8x64xf32, #tpu.memory_space<vmem>>, %arg2: memref<6x64x128xbf16, #tpu.memory_space<vmem>>, %arg3: memref<6x128x64xbf16, #tpu.memory_space<vmem>>, %arg4: memref<6x3x128xf32, #tpu.memory_space<vmem>>, %arg5: memref<7x64xf32, #tpu.memory_space<vmem>>, %arg6: memref<8x1xf32, #tpu.memory_space<vmem>>) attributes {dimension_semantics = [#tpu.dimension_semantics<parallel>], iteration_bounds = array<i64: 1>, scalar_prefetch = 0 : i64, scratch_operands = 0 : i64, tpu.core_type = #tpu.core_type<tc>, window_params = [{transform_indices = @transform_0, window_bounds = array<i64: 8, 64>}, {pipeline_mode = #tpu.pipeline_mode<synchronous>, transform_indices = @transform_1, window_bounds = array<i64: 6, 64, 128>}, {pipeline_mode = #tpu.pipeline_mode<synchronous>, transform_indices = @transform_2, window_bounds = array<i64: 6, 128, 64>}, {pipeline_mode = #tpu.pipeline_mode<synchronous>, transform_indices = @transform_3, window_bounds = array<i64: 6, 3, 128>}, {pipeline_mode = #tpu.pipeline_mode<synchronous>, transform_indices = @transform_4, window_bounds = array<i64: 7, 64>}, {transform_indices = @transform_5, window_bounds = array<i64: 8, 1>}]} {
    %c0 = arith.constant 0 : index
    %c0_0 = arith.constant 0 : index
    %0 = vector.load %arg1[%c0, %c0_0] : memref<8x64xf32, #tpu.memory_space<vmem>>, vector<8x64xf32>
    %c0_1 = arith.constant 0 : index
    %c0_2 = arith.constant 0 : index
    %c0_3 = arith.constant 0 : index
    %1 = vector.load %arg4[%c0_1, %c0_2, %c0_3] : memref<6x3x128xf32, #tpu.memory_space<vmem>>, vector<1x3x128xf32>
    %2 = vector.shape_cast %1 : vector<1x3x128xf32> to vector<3x128xf32>
    %3 = vector.extract_strided_slice %2 {offsets = [0, 0], sizes = [1, 128], strides = [1, 1]} : vector<3x128xf32> to vector<1x128xf32>
    %4 = vector.extract_strided_slice %2 {offsets = [1, 0], sizes = [1, 128], strides = [1, 1]} : vector<3x128xf32> to vector<1x128xf32>
    %5 = vector.extract_strided_slice %2 {offsets = [2, 0], sizes = [1, 128], strides = [1, 1]} : vector<3x128xf32> to vector<1x128xf32>
    %c0_4 = arith.constant 0 : index
    %c0_5 = arith.constant 0 : index
    %6 = vector.load %arg5[%c0_4, %c0_5] : memref<7x64xf32, #tpu.memory_space<vmem>>, vector<1x64xf32>
    %7 = arith.truncf %0 : vector<8x64xf32> to vector<8x64xbf16>
    %c0_6 = arith.constant 0 : index
    %c0_7 = arith.constant 0 : index
    %c0_8 = arith.constant 0 : index
    %8 = vector.load %arg2[%c0_6, %c0_7, %c0_8] : memref<6x64x128xbf16, #tpu.memory_space<vmem>>, vector<1x64x128xbf16>
    %9 = vector.shape_cast %8 : vector<1x64x128xbf16> to vector<64x128xbf16>
    %cst = arith.constant dense<0.000000e+00> : vector<8x128xf32>
    %10 = tpu.matmul %7, %9, %cst {dimension_numbers = #tpu.dot_dimension_numbers<[1], [0], [0], [1], [0, 0, 1, 1], [], []>} : vector<8x64xbf16>, vector<64x128xbf16>, vector<8x128xf32> -> vector<8x128xf32>
    %11 = vector.broadcast %3 : vector<1x128xf32> to vector<8x128xf32>
    %12 = arith.addf %10, %11 : vector<8x128xf32>
    %cst_9 = arith.constant dense<0.000000e+00> : vector<8xf32>
    %13 = vector.multi_reduction <add>, %12, %cst_9 [1] : vector<8x128xf32> to vector<8xf32>
    %14 = vector.shape_cast %13 : vector<8xf32> to vector<8x1xf32>
    %cst_10 = arith.constant 7.812500e-03 : f32
    %15 = vector.broadcast %cst_10 : f32 to vector<8x1xf32>
    %16 = arith.mulf %14, %15 : vector<8x1xf32>
    %17 = arith.mulf %12, %12 : vector<8x128xf32>
    %cst_11 = arith.constant dense<0.000000e+00> : vector<8xf32>
    %18 = vector.multi_reduction <add>, %17, %cst_11 [1] : vector<8x128xf32> to vector<8xf32>
    %19 = vector.shape_cast %18 : vector<8xf32> to vector<8x1xf32>
    %cst_12 = arith.constant 7.812500e-03 : f32
    %20 = vector.broadcast %cst_12 : f32 to vector<8x1xf32>
    %21 = arith.mulf %19, %20 : vector<8x1xf32>
    %22 = arith.mulf %16, %16 : vector<8x1xf32>
    %23 = arith.subf %21, %22 : vector<8x1xf32>
    %cst_13 = arith.constant 0.000000e+00 : f32
    %24 = vector.broadcast %cst_13 : f32 to vector<8x1xf32>
    %25 = arith.maximumf %23, %24 : vector<8x1xf32>
    %26 = vector.broadcast %16 : vector<8x1xf32> to vector<8x128xf32>
    %27 = arith.subf %12, %26 : vector<8x128xf32>
    %cst_14 = arith.constant 9.99999974E-6 : f32
    %28 = vector.broadcast %cst_14 : f32 to vector<8x1xf32>
    %29 = arith.addf %25, %28 : vector<8x1xf32>
    %30 = math.rsqrt %29 : vector<8x1xf32>
    %31 = vector.broadcast %30 : vector<8x1xf32> to vector<8x128xf32>
    %32 = arith.mulf %27, %31 : vector<8x128xf32>
    %33 = vector.broadcast %4 : vector<1x128xf32> to vector<8x128xf32>
    %34 = arith.mulf %32, %33 : vector<8x128xf32>
    %35 = vector.broadcast %5 : vector<1x128xf32> to vector<8x128xf32>
    %36 = arith.addf %34, %35 : vector<8x128xf32>
    %cst_15 = arith.constant 0.000000e+00 : f32
    %37 = vector.broadcast %cst_15 : f32 to vector<8x128xf32>
    %38 = arith.maximumf %36, %37 : vector<8x128xf32>
    %39 = arith.truncf %38 : vector<8x128xf32> to vector<8x128xbf16>
    %c0_16 = arith.constant 0 : index
    %c0_17 = arith.constant 0 : index
    %c0_18 = arith.constant 0 : index
    %40 = vector.load %arg3[%c0_16, %c0_17, %c0_18] : memref<6x128x64xbf16, #tpu.memory_space<vmem>>, vector<1x128x64xbf16>
    %41 = vector.shape_cast %40 : vector<1x128x64xbf16> to vector<128x64xbf16>
    %cst_19 = arith.constant dense<0.000000e+00> : vector<8x64xf32>
    %42 = tpu.matmul %39, %41, %cst_19 {dimension_numbers = #tpu.dot_dimension_numbers<[1], [0], [0], [1], [0, 0, 1, 1], [], []>} : vector<8x128xbf16>, vector<128x64xbf16>, vector<8x64xf32> -> vector<8x64xf32>
    %43 = vector.broadcast %6 : vector<1x64xf32> to vector<8x64xf32>
    %44 = arith.addf %42, %43 : vector<8x64xf32>
    %45 = arith.addf %44, %0 : vector<8x64xf32>
    %cst_20 = arith.constant 5.000000e-01 : f32
    %46 = vector.broadcast %cst_20 : f32 to vector<8x64xf32>
    %47 = arith.mulf %45, %46 : vector<8x64xf32>
    %c1 = arith.constant 1 : index
    %c0_21 = arith.constant 0 : index
    %c0_22 = arith.constant 0 : index
    %48 = vector.load %arg4[%c1, %c0_21, %c0_22] : memref<6x3x128xf32, #tpu.memory_space<vmem>>, vector<1x3x128xf32>
    %49 = vector.shape_cast %48 : vector<1x3x128xf32> to vector<3x128xf32>
    %50 = vector.extract_strided_slice %49 {offsets = [0, 0], sizes = [1, 128], strides = [1, 1]} : vector<3x128xf32> to vector<1x128xf32>
    %51 = vector.extract_strided_slice %49 {offsets = [1, 0], sizes = [1, 128], strides = [1, 1]} : vector<3x128xf32> to vector<1x128xf32>
    %52 = vector.extract_strided_slice %49 {offsets = [2, 0], sizes = [1, 128], strides = [1, 1]} : vector<3x128xf32> to vector<1x128xf32>
    %c1_23 = arith.constant 1 : index
    %c0_24 = arith.constant 0 : index
    %53 = vector.load %arg5[%c1_23, %c0_24] : memref<7x64xf32, #tpu.memory_space<vmem>>, vector<1x64xf32>
    %54 = arith.truncf %47 : vector<8x64xf32> to vector<8x64xbf16>
    %c1_25 = arith.constant 1 : index
    %c0_26 = arith.constant 0 : index
    %c0_27 = arith.constant 0 : index
    %55 = vector.load %arg2[%c1_25, %c0_26, %c0_27] : memref<6x64x128xbf16, #tpu.memory_space<vmem>>, vector<1x64x128xbf16>
    %56 = vector.shape_cast %55 : vector<1x64x128xbf16> to vector<64x128xbf16>
    %cst_28 = arith.constant dense<0.000000e+00> : vector<8x128xf32>
    %57 = tpu.matmul %54, %56, %cst_28 {dimension_numbers = #tpu.dot_dimension_numbers<[1], [0], [0], [1], [0, 0, 1, 1], [], []>} : vector<8x64xbf16>, vector<64x128xbf16>, vector<8x128xf32> -> vector<8x128xf32>
    %58 = vector.broadcast %50 : vector<1x128xf32> to vector<8x128xf32>
    %59 = arith.addf %57, %58 : vector<8x128xf32>
    %cst_29 = arith.constant dense<0.000000e+00> : vector<8xf32>
    %60 = vector.multi_reduction <add>, %59, %cst_29 [1] : vector<8x128xf32> to vector<8xf32>
    %61 = vector.shape_cast %60 : vector<8xf32> to vector<8x1xf32>
    %cst_30 = arith.constant 7.812500e-03 : f32
    %62 = vector.broadcast %cst_30 : f32 to vector<8x1xf32>
    %63 = arith.mulf %61, %62 : vector<8x1xf32>
    %64 = arith.mulf %59, %59 : vector<8x128xf32>
    %cst_31 = arith.constant dense<0.000000e+00> : vector<8xf32>
    %65 = vector.multi_reduction <add>, %64, %cst_31 [1] : vector<8x128xf32> to vector<8xf32>
    %66 = vector.shape_cast %65 : vector<8xf32> to vector<8x1xf32>
    %cst_32 = arith.constant 7.812500e-03 : f32
    %67 = vector.broadcast %cst_32 : f32 to vector<8x1xf32>
    %68 = arith.mulf %66, %67 : vector<8x1xf32>
    %69 = arith.mulf %63, %63 : vector<8x1xf32>
    %70 = arith.subf %68, %69 : vector<8x1xf32>
    %cst_33 = arith.constant 0.000000e+00 : f32
    %71 = vector.broadcast %cst_33 : f32 to vector<8x1xf32>
    %72 = arith.maximumf %70, %71 : vector<8x1xf32>
    %73 = vector.broadcast %63 : vector<8x1xf32> to vector<8x128xf32>
    %74 = arith.subf %59, %73 : vector<8x128xf32>
    %cst_34 = arith.constant 9.99999974E-6 : f32
    %75 = vector.broadcast %cst_34 : f32 to vector<8x1xf32>
    %76 = arith.addf %72, %75 : vector<8x1xf32>
    %77 = math.rsqrt %76 : vector<8x1xf32>
    %78 = vector.broadcast %77 : vector<8x1xf32> to vector<8x128xf32>
    %79 = arith.mulf %74, %78 : vector<8x128xf32>
    %80 = vector.broadcast %51 : vector<1x128xf32> to vector<8x128xf32>
    %81 = arith.mulf %79, %80 : vector<8x128xf32>
    %82 = vector.broadcast %52 : vector<1x128xf32> to vector<8x128xf32>
    %83 = arith.addf %81, %82 : vector<8x128xf32>
    %cst_35 = arith.constant 0.000000e+00 : f32
    %84 = vector.broadcast %cst_35 : f32 to vector<8x128xf32>
    %85 = arith.maximumf %83, %84 : vector<8x128xf32>
    %86 = arith.truncf %85 : vector<8x128xf32> to vector<8x128xbf16>
    %c1_36 = arith.constant 1 : index
    %c0_37 = arith.constant 0 : index
    %c0_38 = arith.constant 0 : index
    %87 = vector.load %arg3[%c1_36, %c0_37, %c0_38] : memref<6x128x64xbf16, #tpu.memory_space<vmem>>, vector<1x128x64xbf16>
    %88 = vector.shape_cast %87 : vector<1x128x64xbf16> to vector<128x64xbf16>
    %cst_39 = arith.constant dense<0.000000e+00> : vector<8x64xf32>
    %89 = tpu.matmul %86, %88, %cst_39 {dimension_numbers = #tpu.dot_dimension_numbers<[1], [0], [0], [1], [0, 0, 1, 1], [], []>} : vector<8x128xbf16>, vector<128x64xbf16>, vector<8x64xf32> -> vector<8x64xf32>
    %90 = vector.broadcast %53 : vector<1x64xf32> to vector<8x64xf32>
    %91 = arith.addf %89, %90 : vector<8x64xf32>
    %92 = arith.addf %91, %47 : vector<8x64xf32>
    %cst_40 = arith.constant 5.000000e-01 : f32
    %93 = vector.broadcast %cst_40 : f32 to vector<8x64xf32>
    %94 = arith.mulf %92, %93 : vector<8x64xf32>
    %c2 = arith.constant 2 : index
    %c0_41 = arith.constant 0 : index
    %c0_42 = arith.constant 0 : index
    %95 = vector.load %arg4[%c2, %c0_41, %c0_42] : memref<6x3x128xf32, #tpu.memory_space<vmem>>, vector<1x3x128xf32>
    %96 = vector.shape_cast %95 : vector<1x3x128xf32> to vector<3x128xf32>
    %97 = vector.extract_strided_slice %96 {offsets = [0, 0], sizes = [1, 128], strides = [1, 1]} : vector<3x128xf32> to vector<1x128xf32>
    %98 = vector.extract_strided_slice %96 {offsets = [1, 0], sizes = [1, 128], strides = [1, 1]} : vector<3x128xf32> to vector<1x128xf32>
    %99 = vector.extract_strided_slice %96 {offsets = [2, 0], sizes = [1, 128], strides = [1, 1]} : vector<3x128xf32> to vector<1x128xf32>
    %c2_43 = arith.constant 2 : index
    %c0_44 = arith.constant 0 : index
    %100 = vector.load %arg5[%c2_43, %c0_44] : memref<7x64xf32, #tpu.memory_space<vmem>>, vector<1x64xf32>
    %101 = arith.truncf %94 : vector<8x64xf32> to vector<8x64xbf16>
    %c2_45 = arith.constant 2 : index
    %c0_46 = arith.constant 0 : index
    %c0_47 = arith.constant 0 : index
    %102 = vector.load %arg2[%c2_45, %c0_46, %c0_47] : memref<6x64x128xbf16, #tpu.memory_space<vmem>>, vector<1x64x128xbf16>
    %103 = vector.shape_cast %102 : vector<1x64x128xbf16> to vector<64x128xbf16>
    %cst_48 = arith.constant dense<0.000000e+00> : vector<8x128xf32>
    %104 = tpu.matmul %101, %103, %cst_48 {dimension_numbers = #tpu.dot_dimension_numbers<[1], [0], [0], [1], [0, 0, 1, 1], [], []>} : vector<8x64xbf16>, vector<64x128xbf16>, vector<8x128xf32> -> vector<8x128xf32>
    %105 = vector.broadcast %97 : vector<1x128xf32> to vector<8x128xf32>
    %106 = arith.addf %104, %105 : vector<8x128xf32>
    %cst_49 = arith.constant dense<0.000000e+00> : vector<8xf32>
    %107 = vector.multi_reduction <add>, %106, %cst_49 [1] : vector<8x128xf32> to vector<8xf32>
    %108 = vector.shape_cast %107 : vector<8xf32> to vector<8x1xf32>
    %cst_50 = arith.constant 7.812500e-03 : f32
    %109 = vector.broadcast %cst_50 : f32 to vector<8x1xf32>
    %110 = arith.mulf %108, %109 : vector<8x1xf32>
    %111 = arith.mulf %106, %106 : vector<8x128xf32>
    %cst_51 = arith.constant dense<0.000000e+00> : vector<8xf32>
    %112 = vector.multi_reduction <add>, %111, %cst_51 [1] : vector<8x128xf32> to vector<8xf32>
    %113 = vector.shape_cast %112 : vector<8xf32> to vector<8x1xf32>
    %cst_52 = arith.constant 7.812500e-03 : f32
    %114 = vector.broadcast %cst_52 : f32 to vector<8x1xf32>
    %115 = arith.mulf %113, %114 : vector<8x1xf32>
    %116 = arith.mulf %110, %110 : vector<8x1xf32>
    %117 = arith.subf %115, %116 : vector<8x1xf32>
    %cst_53 = arith.constant 0.000000e+00 : f32
    %118 = vector.broadcast %cst_53 : f32 to vector<8x1xf32>
    %119 = arith.maximumf %117, %118 : vector<8x1xf32>
    %120 = vector.broadcast %110 : vector<8x1xf32> to vector<8x128xf32>
    %121 = arith.subf %106, %120 : vector<8x128xf32>
    %cst_54 = arith.constant 9.99999974E-6 : f32
    %122 = vector.broadcast %cst_54 : f32 to vector<8x1xf32>
    %123 = arith.addf %119, %122 : vector<8x1xf32>
    %124 = math.rsqrt %123 : vector<8x1xf32>
    %125 = vector.broadcast %124 : vector<8x1xf32> to vector<8x128xf32>
    %126 = arith.mulf %121, %125 : vector<8x128xf32>
    %127 = vector.broadcast %98 : vector<1x128xf32> to vector<8x128xf32>
    %128 = arith.mulf %126, %127 : vector<8x128xf32>
    %129 = vector.broadcast %99 : vector<1x128xf32> to vector<8x128xf32>
    %130 = arith.addf %128, %129 : vector<8x128xf32>
    %cst_55 = arith.constant 0.000000e+00 : f32
    %131 = vector.broadcast %cst_55 : f32 to vector<8x128xf32>
    %132 = arith.maximumf %130, %131 : vector<8x128xf32>
    %133 = arith.truncf %132 : vector<8x128xf32> to vector<8x128xbf16>
    %c2_56 = arith.constant 2 : index
    %c0_57 = arith.constant 0 : index
    %c0_58 = arith.constant 0 : index
    %134 = vector.load %arg3[%c2_56, %c0_57, %c0_58] : memref<6x128x64xbf16, #tpu.memory_space<vmem>>, vector<1x128x64xbf16>
    %135 = vector.shape_cast %134 : vector<1x128x64xbf16> to vector<128x64xbf16>
    %cst_59 = arith.constant dense<0.000000e+00> : vector<8x64xf32>
    %136 = tpu.matmul %133, %135, %cst_59 {dimension_numbers = #tpu.dot_dimension_numbers<[1], [0], [0], [1], [0, 0, 1, 1], [], []>} : vector<8x128xbf16>, vector<128x64xbf16>, vector<8x64xf32> -> vector<8x64xf32>
    %137 = vector.broadcast %100 : vector<1x64xf32> to vector<8x64xf32>
    %138 = arith.addf %136, %137 : vector<8x64xf32>
    %139 = arith.addf %138, %94 : vector<8x64xf32>
    %cst_60 = arith.constant 5.000000e-01 : f32
    %140 = vector.broadcast %cst_60 : f32 to vector<8x64xf32>
    %141 = arith.mulf %139, %140 : vector<8x64xf32>
    %c3 = arith.constant 3 : index
    %c0_61 = arith.constant 0 : index
    %c0_62 = arith.constant 0 : index
    %142 = vector.load %arg4[%c3, %c0_61, %c0_62] : memref<6x3x128xf32, #tpu.memory_space<vmem>>, vector<1x3x128xf32>
    %143 = vector.shape_cast %142 : vector<1x3x128xf32> to vector<3x128xf32>
    %144 = vector.extract_strided_slice %143 {offsets = [0, 0], sizes = [1, 128], strides = [1, 1]} : vector<3x128xf32> to vector<1x128xf32>
    %145 = vector.extract_strided_slice %143 {offsets = [1, 0], sizes = [1, 128], strides = [1, 1]} : vector<3x128xf32> to vector<1x128xf32>
    %146 = vector.extract_strided_slice %143 {offsets = [2, 0], sizes = [1, 128], strides = [1, 1]} : vector<3x128xf32> to vector<1x128xf32>
    %c3_63 = arith.constant 3 : index
    %c0_64 = arith.constant 0 : index
    %147 = vector.load %arg5[%c3_63, %c0_64] : memref<7x64xf32, #tpu.memory_space<vmem>>, vector<1x64xf32>
    %148 = arith.truncf %141 : vector<8x64xf32> to vector<8x64xbf16>
    %c3_65 = arith.constant 3 : index
    %c0_66 = arith.constant 0 : index
    %c0_67 = arith.constant 0 : index
    %149 = vector.load %arg2[%c3_65, %c0_66, %c0_67] : memref<6x64x128xbf16, #tpu.memory_space<vmem>>, vector<1x64x128xbf16>
    %150 = vector.shape_cast %149 : vector<1x64x128xbf16> to vector<64x128xbf16>
    %cst_68 = arith.constant dense<0.000000e+00> : vector<8x128xf32>
    %151 = tpu.matmul %148, %150, %cst_68 {dimension_numbers = #tpu.dot_dimension_numbers<[1], [0], [0], [1], [0, 0, 1, 1], [], []>} : vector<8x64xbf16>, vector<64x128xbf16>, vector<8x128xf32> -> vector<8x128xf32>
    %152 = vector.broadcast %144 : vector<1x128xf32> to vector<8x128xf32>
    %153 = arith.addf %151, %152 : vector<8x128xf32>
    %cst_69 = arith.constant dense<0.000000e+00> : vector<8xf32>
    %154 = vector.multi_reduction <add>, %153, %cst_69 [1] : vector<8x128xf32> to vector<8xf32>
    %155 = vector.shape_cast %154 : vector<8xf32> to vector<8x1xf32>
    %cst_70 = arith.constant 7.812500e-03 : f32
    %156 = vector.broadcast %cst_70 : f32 to vector<8x1xf32>
    %157 = arith.mulf %155, %156 : vector<8x1xf32>
    %158 = arith.mulf %153, %153 : vector<8x128xf32>
    %cst_71 = arith.constant dense<0.000000e+00> : vector<8xf32>
    %159 = vector.multi_reduction <add>, %158, %cst_71 [1] : vector<8x128xf32> to vector<8xf32>
    %160 = vector.shape_cast %159 : vector<8xf32> to vector<8x1xf32>
    %cst_72 = arith.constant 7.812500e-03 : f32
    %161 = vector.broadcast %cst_72 : f32 to vector<8x1xf32>
    %162 = arith.mulf %160, %161 : vector<8x1xf32>
    %163 = arith.mulf %157, %157 : vector<8x1xf32>
    %164 = arith.subf %162, %163 : vector<8x1xf32>
    %cst_73 = arith.constant 0.000000e+00 : f32
    %165 = vector.broadcast %cst_73 : f32 to vector<8x1xf32>
    %166 = arith.maximumf %164, %165 : vector<8x1xf32>
    %167 = vector.broadcast %157 : vector<8x1xf32> to vector<8x128xf32>
    %168 = arith.subf %153, %167 : vector<8x128xf32>
    %cst_74 = arith.constant 9.99999974E-6 : f32
    %169 = vector.broadcast %cst_74 : f32 to vector<8x1xf32>
    %170 = arith.addf %166, %169 : vector<8x1xf32>
    %171 = math.rsqrt %170 : vector<8x1xf32>
    %172 = vector.broadcast %171 : vector<8x1xf32> to vector<8x128xf32>
    %173 = arith.mulf %168, %172 : vector<8x128xf32>
    %174 = vector.broadcast %145 : vector<1x128xf32> to vector<8x128xf32>
    %175 = arith.mulf %173, %174 : vector<8x128xf32>
    %176 = vector.broadcast %146 : vector<1x128xf32> to vector<8x128xf32>
    %177 = arith.addf %175, %176 : vector<8x128xf32>
    %cst_75 = arith.constant 0.000000e+00 : f32
    %178 = vector.broadcast %cst_75 : f32 to vector<8x128xf32>
    %179 = arith.maximumf %177, %178 : vector<8x128xf32>
    %180 = arith.truncf %179 : vector<8x128xf32> to vector<8x128xbf16>
    %c3_76 = arith.constant 3 : index
    %c0_77 = arith.constant 0 : index
    %c0_78 = arith.constant 0 : index
    %181 = vector.load %arg3[%c3_76, %c0_77, %c0_78] : memref<6x128x64xbf16, #tpu.memory_space<vmem>>, vector<1x128x64xbf16>
    %182 = vector.shape_cast %181 : vector<1x128x64xbf16> to vector<128x64xbf16>
    %cst_79 = arith.constant dense<0.000000e+00> : vector<8x64xf32>
    %183 = tpu.matmul %180, %182, %cst_79 {dimension_numbers = #tpu.dot_dimension_numbers<[1], [0], [0], [1], [0, 0, 1, 1], [], []>} : vector<8x128xbf16>, vector<128x64xbf16>, vector<8x64xf32> -> vector<8x64xf32>
    %184 = vector.broadcast %147 : vector<1x64xf32> to vector<8x64xf32>
    %185 = arith.addf %183, %184 : vector<8x64xf32>
    %186 = arith.addf %185, %141 : vector<8x64xf32>
    %cst_80 = arith.constant 5.000000e-01 : f32
    %187 = vector.broadcast %cst_80 : f32 to vector<8x64xf32>
    %188 = arith.mulf %186, %187 : vector<8x64xf32>
    %c4 = arith.constant 4 : index
    %c0_81 = arith.constant 0 : index
    %c0_82 = arith.constant 0 : index
    %189 = vector.load %arg4[%c4, %c0_81, %c0_82] : memref<6x3x128xf32, #tpu.memory_space<vmem>>, vector<1x3x128xf32>
    %190 = vector.shape_cast %189 : vector<1x3x128xf32> to vector<3x128xf32>
    %191 = vector.extract_strided_slice %190 {offsets = [0, 0], sizes = [1, 128], strides = [1, 1]} : vector<3x128xf32> to vector<1x128xf32>
    %192 = vector.extract_strided_slice %190 {offsets = [1, 0], sizes = [1, 128], strides = [1, 1]} : vector<3x128xf32> to vector<1x128xf32>
    %193 = vector.extract_strided_slice %190 {offsets = [2, 0], sizes = [1, 128], strides = [1, 1]} : vector<3x128xf32> to vector<1x128xf32>
    %c4_83 = arith.constant 4 : index
    %c0_84 = arith.constant 0 : index
    %194 = vector.load %arg5[%c4_83, %c0_84] : memref<7x64xf32, #tpu.memory_space<vmem>>, vector<1x64xf32>
    %195 = arith.truncf %188 : vector<8x64xf32> to vector<8x64xbf16>
    %c4_85 = arith.constant 4 : index
    %c0_86 = arith.constant 0 : index
    %c0_87 = arith.constant 0 : index
    %196 = vector.load %arg2[%c4_85, %c0_86, %c0_87] : memref<6x64x128xbf16, #tpu.memory_space<vmem>>, vector<1x64x128xbf16>
    %197 = vector.shape_cast %196 : vector<1x64x128xbf16> to vector<64x128xbf16>
    %cst_88 = arith.constant dense<0.000000e+00> : vector<8x128xf32>
    %198 = tpu.matmul %195, %197, %cst_88 {dimension_numbers = #tpu.dot_dimension_numbers<[1], [0], [0], [1], [0, 0, 1, 1], [], []>} : vector<8x64xbf16>, vector<64x128xbf16>, vector<8x128xf32> -> vector<8x128xf32>
    %199 = vector.broadcast %191 : vector<1x128xf32> to vector<8x128xf32>
    %200 = arith.addf %198, %199 : vector<8x128xf32>
    %cst_89 = arith.constant dense<0.000000e+00> : vector<8xf32>
    %201 = vector.multi_reduction <add>, %200, %cst_89 [1] : vector<8x128xf32> to vector<8xf32>
    %202 = vector.shape_cast %201 : vector<8xf32> to vector<8x1xf32>
    %cst_90 = arith.constant 7.812500e-03 : f32
    %203 = vector.broadcast %cst_90 : f32 to vector<8x1xf32>
    %204 = arith.mulf %202, %203 : vector<8x1xf32>
    %205 = arith.mulf %200, %200 : vector<8x128xf32>
    %cst_91 = arith.constant dense<0.000000e+00> : vector<8xf32>
    %206 = vector.multi_reduction <add>, %205, %cst_91 [1] : vector<8x128xf32> to vector<8xf32>
    %207 = vector.shape_cast %206 : vector<8xf32> to vector<8x1xf32>
    %cst_92 = arith.constant 7.812500e-03 : f32
    %208 = vector.broadcast %cst_92 : f32 to vector<8x1xf32>
    %209 = arith.mulf %207, %208 : vector<8x1xf32>
    %210 = arith.mulf %204, %204 : vector<8x1xf32>
    %211 = arith.subf %209, %210 : vector<8x1xf32>
    %cst_93 = arith.constant 0.000000e+00 : f32
    %212 = vector.broadcast %cst_93 : f32 to vector<8x1xf32>
    %213 = arith.maximumf %211, %212 : vector<8x1xf32>
    %214 = vector.broadcast %204 : vector<8x1xf32> to vector<8x128xf32>
    %215 = arith.subf %200, %214 : vector<8x128xf32>
    %cst_94 = arith.constant 9.99999974E-6 : f32
    %216 = vector.broadcast %cst_94 : f32 to vector<8x1xf32>
    %217 = arith.addf %213, %216 : vector<8x1xf32>
    %218 = math.rsqrt %217 : vector<8x1xf32>
    %219 = vector.broadcast %218 : vector<8x1xf32> to vector<8x128xf32>
    %220 = arith.mulf %215, %219 : vector<8x128xf32>
    %221 = vector.broadcast %192 : vector<1x128xf32> to vector<8x128xf32>
    %222 = arith.mulf %220, %221 : vector<8x128xf32>
    %223 = vector.broadcast %193 : vector<1x128xf32> to vector<8x128xf32>
    %224 = arith.addf %222, %223 : vector<8x128xf32>
    %cst_95 = arith.constant 0.000000e+00 : f32
    %225 = vector.broadcast %cst_95 : f32 to vector<8x128xf32>
    %226 = arith.maximumf %224, %225 : vector<8x128xf32>
    %227 = arith.truncf %226 : vector<8x128xf32> to vector<8x128xbf16>
    %c4_96 = arith.constant 4 : index
    %c0_97 = arith.constant 0 : index
    %c0_98 = arith.constant 0 : index
    %228 = vector.load %arg3[%c4_96, %c0_97, %c0_98] : memref<6x128x64xbf16, #tpu.memory_space<vmem>>, vector<1x128x64xbf16>
    %229 = vector.shape_cast %228 : vector<1x128x64xbf16> to vector<128x64xbf16>
    %cst_99 = arith.constant dense<0.000000e+00> : vector<8x64xf32>
    %230 = tpu.matmul %227, %229, %cst_99 {dimension_numbers = #tpu.dot_dimension_numbers<[1], [0], [0], [1], [0, 0, 1, 1], [], []>} : vector<8x128xbf16>, vector<128x64xbf16>, vector<8x64xf32> -> vector<8x64xf32>
    %231 = vector.broadcast %194 : vector<1x64xf32> to vector<8x64xf32>
    %232 = arith.addf %230, %231 : vector<8x64xf32>
    %233 = arith.addf %232, %188 : vector<8x64xf32>
    %cst_100 = arith.constant 5.000000e-01 : f32
    %234 = vector.broadcast %cst_100 : f32 to vector<8x64xf32>
    %235 = arith.mulf %233, %234 : vector<8x64xf32>
    %c5 = arith.constant 5 : index
    %c0_101 = arith.constant 0 : index
    %c0_102 = arith.constant 0 : index
    %236 = vector.load %arg4[%c5, %c0_101, %c0_102] : memref<6x3x128xf32, #tpu.memory_space<vmem>>, vector<1x3x128xf32>
    %237 = vector.shape_cast %236 : vector<1x3x128xf32> to vector<3x128xf32>
    %238 = vector.extract_strided_slice %237 {offsets = [0, 0], sizes = [1, 128], strides = [1, 1]} : vector<3x128xf32> to vector<1x128xf32>
    %239 = vector.extract_strided_slice %237 {offsets = [1, 0], sizes = [1, 128], strides = [1, 1]} : vector<3x128xf32> to vector<1x128xf32>
    %240 = vector.extract_strided_slice %237 {offsets = [2, 0], sizes = [1, 128], strides = [1, 1]} : vector<3x128xf32> to vector<1x128xf32>
    %c5_103 = arith.constant 5 : index
    %c0_104 = arith.constant 0 : index
    %241 = vector.load %arg5[%c5_103, %c0_104] : memref<7x64xf32, #tpu.memory_space<vmem>>, vector<1x64xf32>
    %242 = arith.truncf %235 : vector<8x64xf32> to vector<8x64xbf16>
    %c5_105 = arith.constant 5 : index
    %c0_106 = arith.constant 0 : index
    %c0_107 = arith.constant 0 : index
    %243 = vector.load %arg2[%c5_105, %c0_106, %c0_107] : memref<6x64x128xbf16, #tpu.memory_space<vmem>>, vector<1x64x128xbf16>
    %244 = vector.shape_cast %243 : vector<1x64x128xbf16> to vector<64x128xbf16>
    %cst_108 = arith.constant dense<0.000000e+00> : vector<8x128xf32>
    %245 = tpu.matmul %242, %244, %cst_108 {dimension_numbers = #tpu.dot_dimension_numbers<[1], [0], [0], [1], [0, 0, 1, 1], [], []>} : vector<8x64xbf16>, vector<64x128xbf16>, vector<8x128xf32> -> vector<8x128xf32>
    %246 = vector.broadcast %238 : vector<1x128xf32> to vector<8x128xf32>
    %247 = arith.addf %245, %246 : vector<8x128xf32>
    %cst_109 = arith.constant dense<0.000000e+00> : vector<8xf32>
    %248 = vector.multi_reduction <add>, %247, %cst_109 [1] : vector<8x128xf32> to vector<8xf32>
    %249 = vector.shape_cast %248 : vector<8xf32> to vector<8x1xf32>
    %cst_110 = arith.constant 7.812500e-03 : f32
    %250 = vector.broadcast %cst_110 : f32 to vector<8x1xf32>
    %251 = arith.mulf %249, %250 : vector<8x1xf32>
    %252 = arith.mulf %247, %247 : vector<8x128xf32>
    %cst_111 = arith.constant dense<0.000000e+00> : vector<8xf32>
    %253 = vector.multi_reduction <add>, %252, %cst_111 [1] : vector<8x128xf32> to vector<8xf32>
    %254 = vector.shape_cast %253 : vector<8xf32> to vector<8x1xf32>
    %cst_112 = arith.constant 7.812500e-03 : f32
    %255 = vector.broadcast %cst_112 : f32 to vector<8x1xf32>
    %256 = arith.mulf %254, %255 : vector<8x1xf32>
    %257 = arith.mulf %251, %251 : vector<8x1xf32>
    %258 = arith.subf %256, %257 : vector<8x1xf32>
    %cst_113 = arith.constant 0.000000e+00 : f32
    %259 = vector.broadcast %cst_113 : f32 to vector<8x1xf32>
    %260 = arith.maximumf %258, %259 : vector<8x1xf32>
    %261 = vector.broadcast %251 : vector<8x1xf32> to vector<8x128xf32>
    %262 = arith.subf %247, %261 : vector<8x128xf32>
    %cst_114 = arith.constant 9.99999974E-6 : f32
    %263 = vector.broadcast %cst_114 : f32 to vector<8x1xf32>
    %264 = arith.addf %260, %263 : vector<8x1xf32>
    %265 = math.rsqrt %264 : vector<8x1xf32>
    %266 = vector.broadcast %265 : vector<8x1xf32> to vector<8x128xf32>
    %267 = arith.mulf %262, %266 : vector<8x128xf32>
    %268 = vector.broadcast %239 : vector<1x128xf32> to vector<8x128xf32>
    %269 = arith.mulf %267, %268 : vector<8x128xf32>
    %270 = vector.broadcast %240 : vector<1x128xf32> to vector<8x128xf32>
    %271 = arith.addf %269, %270 : vector<8x128xf32>
    %cst_115 = arith.constant 0.000000e+00 : f32
    %272 = vector.broadcast %cst_115 : f32 to vector<8x128xf32>
    %273 = arith.maximumf %271, %272 : vector<8x128xf32>
    %274 = arith.truncf %273 : vector<8x128xf32> to vector<8x128xbf16>
    %c5_116 = arith.constant 5 : index
    %c0_117 = arith.constant 0 : index
    %c0_118 = arith.constant 0 : index
    %275 = vector.load %arg3[%c5_116, %c0_117, %c0_118] : memref<6x128x64xbf16, #tpu.memory_space<vmem>>, vector<1x128x64xbf16>
    %276 = vector.shape_cast %275 : vector<1x128x64xbf16> to vector<128x64xbf16>
    %cst_119 = arith.constant dense<0.000000e+00> : vector<8x64xf32>
    %277 = tpu.matmul %274, %276, %cst_119 {dimension_numbers = #tpu.dot_dimension_numbers<[1], [0], [0], [1], [0, 0, 1, 1], [], []>} : vector<8x128xbf16>, vector<128x64xbf16>, vector<8x64xf32> -> vector<8x64xf32>
    %278 = vector.broadcast %241 : vector<1x64xf32> to vector<8x64xf32>
    %279 = arith.addf %277, %278 : vector<8x64xf32>
    %280 = arith.addf %279, %235 : vector<8x64xf32>
    %cst_120 = arith.constant 5.000000e-01 : f32
    %281 = vector.broadcast %cst_120 : f32 to vector<8x64xf32>
    %282 = arith.mulf %280, %281 : vector<8x64xf32>
    %c6 = arith.constant 6 : index
    %c0_121 = arith.constant 0 : index
    %283 = vector.load %arg5[%c6, %c0_121] : memref<7x64xf32, #tpu.memory_space<vmem>>, vector<1x64xf32>
    %284 = vector.broadcast %283 : vector<1x64xf32> to vector<8x64xf32>
    %285 = arith.mulf %282, %284 : vector<8x64xf32>
    %cst_122 = arith.constant dense<0.000000e+00> : vector<8xf32>
    %286 = vector.multi_reduction <add>, %285, %cst_122 [1] : vector<8x64xf32> to vector<8xf32>
    %287 = vector.shape_cast %286 : vector<8xf32> to vector<8x1xf32>
    %c0_123 = arith.constant 0 : index
    %c0_124 = arith.constant 0 : index
    %288 = vector.load %arg6[%c0_123, %c0_124] : memref<8x1xf32, #tpu.memory_space<vmem>>, vector<8x1xf32>
    tpu.vector_store %arg6[%c0_123, %c0_124], %287 {strides = array<i32>} : memref<8x1xf32, #tpu.memory_space<vmem>>, vector<8x1xf32>,
    return
  }
  func.func @transform_0(%arg0: i32) -> (i32, i32) {
    %c0_i32 = arith.constant 0 : i32
    %c0_i32_0 = arith.constant 0 : i32
    return %arg0, %c0_i32 : i32, i32
  }
  func.func @transform_1(%arg0: i32) -> (i32, i32, i32) {
    %c0_i32 = arith.constant 0 : i32
    %c0_i32_0 = arith.constant 0 : i32
    %c0_i32_1 = arith.constant 0 : i32
    %c0_i32_2 = arith.constant 0 : i32
    return %c0_i32, %c0_i32_0, %c0_i32_1 : i32, i32, i32
  }
  func.func @transform_2(%arg0: i32) -> (i32, i32, i32) {
    %c0_i32 = arith.constant 0 : i32
    %c0_i32_0 = arith.constant 0 : i32
    %c0_i32_1 = arith.constant 0 : i32
    %c0_i32_2 = arith.constant 0 : i32
    return %c0_i32, %c0_i32_0, %c0_i32_1 : i32, i32, i32
  }
  func.func @transform_3(%arg0: i32) -> (i32, i32, i32) {
    %c0_i32 = arith.constant 0 : i32
    %c0_i32_0 = arith.constant 0 : i32
    %c0_i32_1 = arith.constant 0 : i32
    %c0_i32_2 = arith.constant 0 : i32
    return %c0_i32, %c0_i32_0, %c0_i32_1 : i32, i32, i32
  }
  func.func @transform_4(%arg0: i32) -> (i32, i32) {
    %c0_i32 = arith.constant 0 : i32
    %c0_i32_0 = arith.constant 0 : i32
    %c0_i32_1 = arith.constant 0 : i32
    return %c0_i32, %c0_i32_0 : i32, i32
  }
  func.func @transform_5(%arg0: i32) -> (i32, i32) {
    %c0_i32 = arith.constant 0 : i32
    %c0_i32_0 = arith.constant 0 : i32
    return %arg0, %c0_i32 : i32, i32
  }
}

</mosaic_0001>

<bundles_post_ra>
// kernel: tpu_custom_call.1
= control target key start
LH: loop header
LB: loop body
LE: loop exit
PB: predicated region body
PF: predicated region fallthrough
CT: control target
= control target key end

     0   :  { %v1933_v0 = vmov 0.0   ;;  %vm1934_vm0 = vmmov 0   ;;  %vm61_vm1 = vcmask 523264   ;;  %v33_v7 = vlaneseq  ;;  %s2378_s1 = inlined_call_operand.vmem [shape: bf16[6,64,128], index: 1, kind: input, shape index: {}]   ;;  %s2379_s0 = inlined_call_operand.vmem [shape: f32[8,64], index: 0, kind: input, shape index: {}]   ;;  %s2380_s3 = inlined_call_operand.vmem [shape: f32[6,3,128], index: 3, kind: input, shape index: {}]   ;;  %s2381_s2 = inlined_call_operand.vmem [shape: bf16[6,128,64], index: 2, kind: input, shape index: {}]   ;;  %s2382_s4 = inlined_call_operand.vmem [shape: f32[7,64], index: 4, kind: input, shape index: {}]   ;;  %s2383_s5 = inlined_call_operand.vmem [shape: f32[8,1], index: 5, kind: output, shape index: {}]  }
   0x1   :  { %1655 = vmatprep.subr.bf16.mxu1 %v1933_v0  ;;  %v1849_v1 = vld [vmem:[%s2378_s1] sm:$0xff]   ;;  %1663 = vmatprep.mubr.msk.bf16.mxu1 %vm1934_vm0, %v1933_v0  ;;  %v1850_v2 = vld [vmem:[%s2378_s1 + $0x8] sm:$0xff]   ;;  %v1851_v3 = vld [vmem:[%s2378_s1 + $0x10] sm:$0xff]   ;;  %vm1355_vm2 = vcmask 7168  }
   0x2   :  { %1687 = vmatprep.subr.bf16.mxu0 %v1933_v0  ;;  %1695 = vmatprep.mubr.msk.bf16.mxu0 %vm1934_vm0, %v1933_v0  ;;  %v1852_v4 = vld [vmem:[%s2378_s1 + $0x18] sm:$0xff]   ;;  %v1988_v5 = vld [vmem:[%s2379_s0] sm:$0xff]  ;;  %v34_v8 = vshrl.u32 %v33_v7, 7  ;;  %v1854_v19 = vld [vmem:[%s2381_s2 + $0x8] sm:$0xff]  }
   0x3   :  { %1656 = vmatpush3.bf16.msra.mxu1 %v1849_v1  ;;  %v24_v6 = vpack.c.bf16 %v1988_v5, %v1988_v5  ;;  %v22_v10 = vld [vmem:[%s2380_s3] sm:$0x7]  ;;  %v1855_v20 = vld [vmem:[%s2381_s2 + $0x10] sm:$0xff]   ;;  %v1856_v21 = vld [vmem:[%s2381_s2 + $0x18] sm:$0xff]  }
   0x4   :  { %1657 = vmatprep.subr.bf16.mxu1 %v1933_v0  ;;  %v1997_v9 = vsub.s32 0, %v34_v8  ;;  %v1853_v18 = vld [vmem:[%s2381_s2] sm:$0xff]   ;;  %v1858_v23 = vld [vmem:[%s2381_s2 + $0x28] sm:$0xff]   ;;  %v1859_v24 = vld [vmem:[%s2381_s2 + $0x30] sm:$0xff]   ;;  %v2043_v36 = vsub.s32 1, %v34_v8  ;;  %v2045_v37 = vsub.s32 2, %v34_v8 }
   0x5   :  { %v1857_v22 = vld [vmem:[%s2381_s2 + $0x20] sm:$0xff]   ;;  %v1860_v25 = vld [vmem:[%s2381_s2 + $0x38] sm:$0xff]   ;;  %v1862_v27 = vld [vmem:[%s2378_s1 + $0x28] sm:$0xff]  }
   0x6   :  { %v36_v11 = vrot.slane %v22_v10, %v1997_v9  ;;  %v1861_v26 = vld [vmem:[%s2378_s1 + $0x20] sm:$0xff]   ;;  %v122_v38 = vrot.slane %v22_v10, %v2043_v36  ;;  %v127_v41 = vrot.slane %v22_v10, %v2045_v37  ;;  %v1863_v47 = vld [vmem:[%s2378_s1 + $0x30] sm:$0xff]   ;;  %v1864_v48 = vld [vmem:[%s2378_s1 + $0x38] sm:$0xff]  }
   0x7   :  { %1658 = vmatpush3.bf16.msra.mxu1 %v1850_v2  ;;  %1688 = vmatpush3.bf16.msra.mxu0 %v1861_v26  ;;  %v1366_v49 = vld [vmem:[%s2382_s4] ss:$0 sm:$0xff]  ;;  %v1375_v58 = vld [vmem:[%s2380_s3 + $0x4] sm:$0x7]  ;;  %v1870_v8 = vld [vmem:[%s2381_s2 + $0x68] sm:$0xff]  }
   0x8   :  { %1659 = vmatprep.subr.bf16.mxu1 %v1933_v0  ;;  %1689 = vmatprep.subr.bf16.mxu0 %v1933_v0  ;;  %v257_v59 = vrot.slane %v1375_v58, %v1997_v9  ;;  %v1869_v7 = vld [vmem:[%s2381_s2 + $0x60] sm:$0xff]   ;;  %v1871_v10 = vld [vmem:[%s2381_s2 + $0x70] sm:$0xff]  }
   0xb   :  { %1660 = vmatpush3.bf16.msra.mxu1 %v1851_v3  ;;  %1690 = vmatpush3.bf16.msra.mxu0 %v1862_v27  ;;  %v1865_v3 = vld [vmem:[%s2381_s2 + $0x40] sm:$0xff]  }
   0xc   :  { %1661 = vmatprep.subr.bf16.mxu1 %v1933_v0  ;;  %1691 = vmatprep.subr.bf16.mxu0 %v1933_v0 }
   0xf   :  { %1662 = vmatpush3.bf16.msra.mxu1 %v1852_v4  ;;  %1692 = vmatpush3.bf16.msra.mxu0 %v1863_v47  ;;  %v1866_v4 = vld [vmem:[%s2381_s2 + $0x48] sm:$0xff]  }
  0x10   :  { %1667 = vmatprep.subr.bf16.mxu1 %v1933_v0  ;;  %1693 = vmatprep.subr.bf16.mxu0 %v1933_v0 }
  0x12   :  { %1664 = vmatmul.mubr.msk.bf16.vlgmr.msra.gmra.mrb[0].mxu1 %vm61_vm1, %v24_v6  ;;  %v1868_v6 = vld [vmem:[%s2381_s2 + $0x58] sm:$0xff]  }
  0x13   :  { %1683 = vmatprep.mubr.msk.bf16.mxu1 %vm1934_vm0, %v1933_v0  ;;  %1668 = vmatpush3.bf16.msra.mxu1 %v1853_v18 }
  0x14   :  { %1669 = vmatprep.subr.bf16.mxu1 %v1933_v0  ;;  %1694 = vmatpush3.bf16.msra.mxu0 %v1864_v48 }
  0x15   :  { %1699 = vmatprep.subr.bf16.mxu0 %v1933_v0 }
  0x17   :  { %1670 = vmatpush3.bf16.msra.mxu1 %v1854_v19 }
  0x18   :  { %1671 = vmatprep.subr.bf16.mxu1 %v1933_v0 }
  0x1b   :  { %1672 = vmatpush3.bf16.msra.mxu1 %v1855_v20 }
  0x1c   :  { %1673 = vmatprep.subr.bf16.mxu1 %v1933_v0 }
  0x1f   :  { %1674 = vmatpush3.bf16.msra.mxu1 %v1856_v21 }
  0x20   :  { %1675 = vmatprep.subr.bf16.mxu1 %v1933_v0 }
  0x23   :  { %1676 = vmatpush3.bf16.msra.mxu1 %v1857_v22  ;;  %v342_v22 = vrot.slane %v1375_v58, %v2043_v36 }
  0x24   :  { %1677 = vmatprep.subr.bf16.mxu1 %v1933_v0 }
  0x27   :  { %1678 = vmatpush3.bf16.msra.mxu1 %v1858_v23 }
  0x28   :  { %1679 = vmatprep.subr.bf16.mxu1 %v1933_v0 }
  0x2b   :  { %1680 = vmatpush3.bf16.msra.mxu1 %v1859_v24 }
  0x2c   :  { %1681 = vmatprep.subr.bf16.mxu1 %v1933_v0 }
  0x2f   :  { %1682 = vmatpush3.bf16.msra.mxu1 %v1860_v25  ;;  %v347_v25 = vrot.slane %v1375_v58, %v2045_v37  ;;  %v1883_v58 = vld [vmem:[%s2381_s2 + $0xb0] sm:$0xff]  }
  0x30   :  { %1719 = vmatprep.subr.bf16.mxu1 %v1933_v0 }
  0xe5   :  { %v99_v12 = vpop.f32.mrb[0].mxu1 }
  0xe6   :  { %v100_v13 = vadd.f32 %v99_v12, %v36_v11  ;;  %v1665_v14 = vpop.f32.mrb[1].mxu1  ;;  %v1872_v11 = vld [vmem:[%s2381_s2 + $0x78] sm:$0xff]   ;;  %v1873_v12 = vld [vmem:[%s2378_s1 + $0x40] sm:$0xff]  }
  0xe7   :  { %v102_v15 = vpop.f32.mrb[2].mxu1 }
  0xe8   :  { %105 = vadd.xlane.f32.xlu0 %v100_v13  ;;  %v1666_v16 = vpop.f32.mrb[3].mxu1  ;;  %v108_v17 = vmul.f32 %v100_v13, %v100_v13 }
  0xec   :  { %109 = vadd.xlane.f32.xlu0 %v108_v17 }
 0x175   :  { %v106_v28 = vpop.xlane.xlu0 %105 }
 0x176   :  { %v107_v29 = vmul.f32 0.0078125, %v106_v28 }
 0x178   :  { %v112_v31 = vmul.f32 %v107_v29, %v107_v29  ;;  %v115_v39 = vsub.f32 %v100_v13, %v107_v29  ;;  %v1874_v13 = vld [vmem:[%s2378_s1 + $0x48] sm:$0xff]  }
 0x179   :  { %v110_v30 = vpop.xlane.xlu0 %109 }
 0x17a   :  { %v111_v32 = vmul.f32 0.0078125, %v110_v30 }
 0x17c   :  { %v113_v33 = vsub.f32 %v111_v32, %v112_v31  ;;  %v1875_v31 = vld [vmem:[%s2378_s1 + $0x50] sm:$0xff]   ;;  %v1876_v32 = vld [vmem:[%s2378_s1 + $0x58] sm:$0xff]  }
 0x17e   :  { %v114_v34 = vmax.f32 %v113_v33, 0.0  ;;  %v1405_v33 = vld [vmem:[%s2382_s4 + $0x1] ss:$0 sm:$0xff] }
 0x180   :  { %v116_v35 = vadd.f32 1e-05, %v114_v34 }
 0x182   :  { %1921 = vrsqrt.f32 %v116_v35 }
 0x18c   :  { %v1922_v40 = vpop.eup %1921 }
 0x18d   :  { %v118_v42 = vmul.f32 %v1922_v40, %v115_v39 }
 0x18f   :  { %v123_v43 = vmul.f32 %v122_v38, %v118_v42 }
 0x191   :  { %v128_v44 = vadd.f32 %v127_v41, %v123_v43 }
 0x193   :  { %v129_v45 = vmax.f32 %v128_v44, 0.0  ;;  %v1414_v44 = vld [vmem:[%s2380_s3 + $0x8] sm:$0x7] }
 0x195   :  { %v130_v46 = vpack.c.bf16 %v129_v45, %v129_v45  ;;  %v478_v45 = vrot.slane %v1414_v44, %v1997_v9 }
 0x197   :  { %1684 = vmatmul.mubr.bf16.vlgmr.msra.gmra.mrb[4].mxu1 %v130_v46 }
 0x198   :  { %1727 = vmatprep.mubr.msk.bf16.mxu1 %vm1934_vm0, %v1933_v0  ;;  %1720 = vmatpush3.bf16.msra.mxu1 %v1873_v12 }
 0x199   :  { %1721 = vmatprep.subr.bf16.mxu1 %v1933_v0 }
 0x19c   :  { %1722 = vmatpush3.bf16.msra.mxu1 %v1874_v13 }
 0x19d   :  { %1723 = vmatprep.subr.bf16.mxu1 %v1933_v0 }
 0x1a0   :  { %1724 = vmatpush3.bf16.msra.mxu1 %v1875_v31 }
 0x1a1   :  { %1725 = vmatprep.subr.bf16.mxu1 %v1933_v0 }
 0x1a4   :  { %1726 = vmatpush3.bf16.msra.mxu1 %v1876_v32 }
 0x1a5   :  { %1731 = vmatprep.subr.bf16.mxu1 %v1933_v0 }
 0x26a   :  { %v233_v50 = vpop.f32.mrb[4].mxu1 }
 0x26b   :  { %v234_v51 = vadd.f32 %v1366_v49, %v233_v50  ;;  %v1685_v52 = vpop.f32.mrb[5].mxu1 }
 0x26c   :  { %v236_v53 = vpop.f32.mrb[6].mxu1  ;;  %v1877_v52 = vld [vmem:[%s2381_s2 + $0x80] sm:$0xff]  }
 0x26d   :  { %v239_v54 = vadd.f32 %v234_v51, %v1988_v5  ;;  %v1686_v55 = vpop.f32.mrb[7].mxu1  ;;  %v1867_v5 = vld [vmem:[%s2381_s2 + $0x50] sm:$0xff]   ;;  %v1878_v53 = vld [vmem:[%s2381_s2 + $0x88] sm:$0xff]  }
 0x26e   :  { %v1880_v55 = vld [vmem:[%s2381_s2 + $0x98] sm:$0xff]  }
 0x26f   :  { %v2063_v56 = vmul.f32 0.5, %v239_v54  ;;  %v1879_v54 = vld [vmem:[%s2381_s2 + $0x90] sm:$0xff]  }
 0x271   :  { %v244_v57 = vpack.c.bf16 %v2063_v56, %v2063_v56 }
 0x273   :  { %1696 = vmatmul.mubr.msk.bf16.vlgmr.msra.gmra.mrb[0].mxu0 %vm61_vm1, %v244_v57  ;;  %v1882_v57 = vld [vmem:[%s2381_s2 + $0xa8] sm:$0xff]  }
 0x274   :  { %1715 = vmatprep.mubr.msk.bf16.mxu0 %vm1934_vm0, %v1933_v0  ;;  %1700 = vmatpush3.bf16.msra.mxu0 %v1865_v3 }
 0x275   :  { %1701 = vmatprep.subr.bf16.mxu0 %v1933_v0 }
 0x278   :  { %1702 = vmatpush3.bf16.msra.mxu0 %v1866_v4 }
 0x279   :  { %1703 = vmatprep.subr.bf16.mxu0 %v1933_v0 }
 0x27c   :  { %1704 = vmatpush3.bf16.msra.mxu0 %v1867_v5 }
 0x27d   :  { %1705 = vmatprep.subr.bf16.mxu0 %v1933_v0 }
 0x280   :  { %1706 = vmatpush3.bf16.msra.mxu0 %v1868_v6 }
 0x281   :  { %1707 = vmatprep.subr.bf16.mxu0 %v1933_v0 }
 0x284   :  { %1708 = vmatpush3.bf16.msra.mxu0 %v1869_v7  ;;  %v563_v7 = vrot.slane %v1414_v44, %v2043_v36 }
 0x285   :  { %1709 = vmatprep.subr.bf16.mxu0 %v1933_v0 }
 0x288   :  { %1710 = vmatpush3.bf16.msra.mxu0 %v1870_v8 }
 0x289   :  { %1711 = vmatprep.subr.bf16.mxu0 %v1933_v0 }
 0x28c   :  { %1712 = vmatpush3.bf16.msra.mxu0 %v1871_v10 }
 0x28d   :  { %1713 = vmatprep.subr.bf16.mxu0 %v1933_v0 }
 0x290   :  { %1714 = vmatpush3.bf16.msra.mxu0 %v1872_v11  ;;  %v568_v11 = vrot.slane %v1414_v44, %v2045_v37  ;;  %v1895_v44 = vld [vmem:[%s2381_s2 + $0xf0] sm:$0xff]  }
 0x291   :  { %1751 = vmatprep.subr.bf16.mxu0 %v1933_v0 }
 0x346   :  { %v319_v60 = vpop.f32.mrb[0].mxu0 }
 0x347   :  { %v320_v61 = vadd.f32 %v319_v60, %v257_v59  ;;  %v1697_v62 = vpop.f32.mrb[1].mxu0  ;;  %v1884_v59 = vld [vmem:[%s2381_s2 + $0xb8] sm:$0xff]   ;;  %v1885_v60 = vld [vmem:[%s2378_s1 + $0x60] sm:$0xff]  }
 0x348   :  { %v322_v63 = vpop.f32.mrb[2].mxu0 }
 0x349   :  { %325 = vadd.xlane.f32.xlu1 %v320_v61  ;;  %v1698_v1 = vpop.f32.mrb[3].mxu0  ;;  %v328_v2 = vmul.f32 %v320_v61, %v320_v61 }
 0x34d   :  { %329 = vadd.xlane.f32.xlu1 %v328_v2 }
 0x3d6   :  { %v326_v14 = vpop.xlane.xlu1 %325 }
 0x3d7   :  { %v327_v15 = vmul.f32 0.0078125, %v326_v14 }
 0x3d9   :  { %v332_v17 = vmul.f32 %v327_v15, %v327_v15  ;;  %v335_v23 = vsub.f32 %v320_v61, %v327_v15  ;;  %v1886_v61 = vld [vmem:[%s2378_s1 + $0x68] sm:$0xff]  }
 0x3da   :  { %v330_v16 = vpop.xlane.xlu1 %329 }
 0x3db   :  { %v331_v18 = vmul.f32 0.0078125, %v330_v16 }
 0x3dd   :  { %v333_v19 = vsub.f32 %v331_v18, %v332_v17  ;;  %v1887_v17 = vld [vmem:[%s2378_s1 + $0x70] sm:$0xff]   ;;  %v1888_v18 = vld [vmem:[%s2378_s1 + $0x78] sm:$0xff]  }
 0x3df   :  { %v334_v20 = vmax.f32 %v333_v19, 0.0  ;;  %v1444_v19 = vld [vmem:[%s2382_s4 + $0x2] ss:$0 sm:$0xff] }
 0x3e1   :  { %v336_v21 = vadd.f32 1e-05, %v334_v20 }
 0x3e3   :  { %1923 = vrsqrt.f32 %v336_v21 }
 0x3ed   :  { %v1924_v24 = vpop.eup %1923 }
 0x3ee   :  { %v338_v26 = vmul.f32 %v1924_v24, %v335_v23 }
 0x3f0   :  { %v343_v27 = vmul.f32 %v342_v22, %v338_v26 }
 0x3f2   :  { %v348_v28 = vadd.f32 %v347_v25, %v343_v27 }
 0x3f4   :  { %v349_v29 = vmax.f32 %v348_v28, 0.0  ;;  %v1453_v28 = vld [vmem:[%s2380_s3 + $0xc] sm:$0x7] }
 0x3f6   :  { %v350_v30 = vpack.c.bf16 %v349_v29, %v349_v29  ;;  %v699_v29 = vrot.slane %v1453_v28, %v1997_v9 }
 0x3f8   :  { %1716 = vmatmul.mubr.bf16.vlgmr.msra.gmra.mrb[4].mxu0 %v350_v30 }
 0x3f9   :  { %1759 = vmatprep.mubr.msk.bf16.mxu0 %vm1934_vm0, %v1933_v0  ;;  %1752 = vmatpush3.bf16.msra.mxu0 %v1885_v60 }
 0x3fa   :  { %1753 = vmatprep.subr.bf16.mxu0 %v1933_v0 }
 0x3fd   :  { %1754 = vmatpush3.bf16.msra.mxu0 %v1886_v61 }
 0x3fe   :  { %1755 = vmatprep.subr.bf16.mxu0 %v1933_v0 }
 0x401   :  { %1756 = vmatpush3.bf16.msra.mxu0 %v1887_v17 }
 0x402   :  { %1757 = vmatprep.subr.bf16.mxu0 %v1933_v0 }
 0x405   :  { %1758 = vmatpush3.bf16.msra.mxu0 %v1888_v18 }
 0x406   :  { %1763 = vmatprep.subr.bf16.mxu0 %v1933_v0 }
 0x4cb   :  { %v454_v34 = vpop.f32.mrb[4].mxu0 }
 0x4cc   :  { %v455_v35 = vadd.f32 %v1405_v33, %v454_v34  ;;  %v1717_v38 = vpop.f32.mrb[5].mxu0 }
 0x4cd   :  { %v457_v39 = vpop.f32.mrb[6].mxu0  ;;  %v1889_v38 = vld [vmem:[%s2381_s2 + $0xc0] sm:$0xff]  }
 0x4ce   :  { %v460_v40 = vadd.f32 %v455_v35, %v2063_v56  ;;  %v1718_v41 = vpop.f32.mrb[7].mxu0  ;;  %v1881_v56 = vld [vmem:[%s2381_s2 + $0xa0] sm:$0xff]   ;;  %v1890_v39 = vld [vmem:[%s2381_s2 + $0xc8] sm:$0xff]  }
 0x4cf   :  { %v1892_v41 = vld [vmem:[%s2381_s2 + $0xd8] sm:$0xff]  }
 0x4d0   :  { %v2130_v42 = vmul.f32 0.5, %v460_v40  ;;  %v1891_v40 = vld [vmem:[%s2381_s2 + $0xd0] sm:$0xff]  }
 0x4d2   :  { %v465_v43 = vpack.c.bf16 %v2130_v42, %v2130_v42 }
 0x4d4   :  { %1728 = vmatmul.mubr.msk.bf16.vlgmr.msra.gmra.mrb[8].mxu1 %vm61_vm1, %v465_v43  ;;  %v1894_v43 = vld [vmem:[%s2381_s2 + $0xe8] sm:$0xff]  }
 0x4d5   :  { %1747 = vmatprep.mubr.msk.bf16.mxu1 %vm1934_vm0, %v1933_v0  ;;  %1732 = vmatpush3.bf16.msra.mxu1 %v1877_v52 }
 0x4d6   :  { %1733 = vmatprep.subr.bf16.mxu1 %v1933_v0 }
 0x4d9   :  { %1734 = vmatpush3.bf16.msra.mxu1 %v1878_v53 }
 0x4da   :  { %1735 = vmatprep.subr.bf16.mxu1 %v1933_v0 }
 0x4dd   :  { %1736 = vmatpush3.bf16.msra.mxu1 %v1879_v54 }
 0x4de   :  { %1737 = vmatprep.subr.bf16.mxu1 %v1933_v0 }
 0x4e1   :  { %1738 = vmatpush3.bf16.msra.mxu1 %v1880_v55 }
 0x4e2   :  { %1739 = vmatprep.subr.bf16.mxu1 %v1933_v0 }
 0x4e5   :  { %1740 = vmatpush3.bf16.msra.mxu1 %v1881_v56  ;;  %v784_v56 = vrot.slane %v1453_v28, %v2043_v36 }
 0x4e6   :  { %1741 = vmatprep.subr.bf16.mxu1 %v1933_v0 }
 0x4e9   :  { %1742 = vmatpush3.bf16.msra.mxu1 %v1882_v57 }
 0x4ea   :  { %1743 = vmatprep.subr.bf16.mxu1 %v1933_v0 }
 0x4ed   :  { %1744 = vmatpush3.bf16.msra.mxu1 %v1883_v58 }
 0x4ee   :  { %1745 = vmatprep.subr.bf16.mxu1 %v1933_v0 }
 0x4f1   :  { %1746 = vmatpush3.bf16.msra.mxu1 %v1884_v59  ;;  %v789_v59 = vrot.slane %v1453_v28, %v2045_v37  ;;  %v1907_v28 = vld [vmem:[%s2381_s2 + $0x130] sm:$0xff]  }
 0x4f2   :  { %1783 = vmatprep.subr.bf16.mxu1 %v1933_v0 }
 0x5a7   :  { %v540_v46 = vpop.f32.mrb[8].mxu1 }
 0x5a8   :  { %v541_v47 = vadd.f32 %v540_v46, %v478_v45  ;;  %v1729_v48 = vpop.f32.mrb[9].mxu1  ;;  %v1896_v45 = vld [vmem:[%s2381_s2 + $0xf8] sm:$0xff]   ;;  %v1897_v46 = vld [vmem:[%s2378_s1 + $0x80] sm:$0xff]  }
 0x5a9   :  { %v543_v49 = vpop.f32.mrb[10].mxu1 }
 0x5aa   :  { %546 = vadd.xlane.f32.xlu0 %v541_v47  ;;  %v1730_v50 = vpop.f32.mrb[11].mxu1  ;;  %v549_v51 = vmul.f32 %v541_v47, %v541_v47 }
 0x5ac   :  { %550 = vadd.xlane.f32.xlu1 %v549_v51 }
 0x637   :  { %v547_v62 = vpop.xlane.xlu0 %546 }
 0x638   :  { %v548_v63 = vmul.f32 0.0078125, %v547_v62 }
 0x639   :  { %v551_v1 = vpop.xlane.xlu1 %550 }
 0x63a   :  { %v553_v2 = vmul.f32 %v548_v63, %v548_v63  ;;  %v552_v3 = vmul.f32 0.0078125, %v551_v1  ;;  %v556_v8 = vsub.f32 %v541_v47, %v548_v63  ;;  %v1898_v47 = vld [vmem:[%s2378_s1 + $0x88] sm:$0xff]  }
 0x63c   :  { %v554_v4 = vsub.f32 %v552_v3, %v553_v2  ;;  %v1899_v2 = vld [vmem:[%s2378_s1 + $0x90] sm:$0xff]   ;;  %v1900_v3 = vld [vmem:[%s2378_s1 + $0x98] sm:$0xff]  }
 0x63e   :  { %v555_v5 = vmax.f32 %v554_v4, 0.0  ;;  %v1483_v4 = vld [vmem:[%s2382_s4 + $0x3] ss:$0 sm:$0xff] }
 0x640   :  { %v557_v6 = vadd.f32 1e-05, %v555_v5 }
 0x642   :  { %1925 = vrsqrt.f32 %v557_v6 }
 0x64c   :  { %v1926_v10 = vpop.eup %1925 }
 0x64d   :  { %v559_v12 = vmul.f32 %v1926_v10, %v556_v8 }
 0x64f   :  { %v564_v13 = vmul.f32 %v563_v7, %v559_v12 }
 0x651   :  { %v569_v14 = vadd.f32 %v568_v11, %v564_v13 }
 0x653   :  { %v570_v15 = vmax.f32 %v569_v14, 0.0  ;;  %v1492_v14 = vld [vmem:[%s2380_s3 + $0x10] sm:$0x7] }
 0x655   :  { %v571_v16 = vpack.c.bf16 %v570_v15, %v570_v15  ;;  %v920_v15 = vrot.slane %v1492_v14, %v1997_v9 }
 0x657   :  { %1748 = vmatmul.mubr.bf16.vlgmr.msra.gmra.mrb[12].mxu1 %v571_v16 }
 0x658   :  { %1791 = vmatprep.mubr.msk.bf16.mxu1 %vm1934_vm0, %v1933_v0  ;;  %1784 = vmatpush3.bf16.msra.mxu1 %v1897_v46 }
 0x659   :  { %1785 = vmatprep.subr.bf16.mxu1 %v1933_v0 }
 0x65c   :  { %1786 = vmatpush3.bf16.msra.mxu1 %v1898_v47 }
 0x65d   :  { %1787 = vmatprep.subr.bf16.mxu1 %v1933_v0 }
 0x660   :  { %1788 = vmatpush3.bf16.msra.mxu1 %v1899_v2 }
 0x661   :  { %1789 = vmatprep.subr.bf16.mxu1 %v1933_v0 }
 0x664   :  { %1790 = vmatpush3.bf16.msra.mxu1 %v1900_v3 }
 0x665   :  { %1795 = vmatprep.subr.bf16.mxu1 %v1933_v0 }
 0x72a   :  { %v675_v20 = vpop.f32.mrb[12].mxu1 }
 0x72b   :  { %v676_v21 = vadd.f32 %v1444_v19, %v675_v20  ;;  %v1749_v22 = vpop.f32.mrb[13].mxu1 }
 0x72c   :  { %v678_v23 = vpop.f32.mrb[14].mxu1  ;;  %v1901_v22 = vld [vmem:[%s2381_s2 + $0x100] sm:$0xff]  }
 0x72d   :  { %v681_v24 = vadd.f32 %v676_v21, %v2130_v42  ;;  %v1750_v25 = vpop.f32.mrb[15].mxu1  ;;  %v1893_v42 = vld [vmem:[%s2381_s2 + $0xe0] sm:$0xff]   ;;  %v1902_v23 = vld [vmem:[%s2381_s2 + $0x108] sm:$0xff]  }
 0x72e   :  { %v1904_v25 = vld [vmem:[%s2381_s2 + $0x118] sm:$0xff]  }
 0x72f   :  { %v2197_v26 = vmul.f32 0.5, %v681_v24  ;;  %v1903_v24 = vld [vmem:[%s2381_s2 + $0x110] sm:$0xff]  }
 0x731   :  { %v686_v27 = vpack.c.bf16 %v2197_v26, %v2197_v26 }
 0x733   :  { %1760 = vmatmul.mubr.msk.bf16.vlgmr.msra.gmra.mrb[8].mxu0 %vm61_vm1, %v686_v27  ;;  %v1906_v27 = vld [vmem:[%s2381_s2 + $0x128] sm:$0xff]  }
 0x734   :  { %1779 = vmatprep.mubr.msk.bf16.mxu0 %vm1934_vm0, %v1933_v0  ;;  %1764 = vmatpush3.bf16.msra.mxu0 %v1889_v38 }
 0x735   :  { %1765 = vmatprep.subr.bf16.mxu0 %v1933_v0 }
 0x738   :  { %1766 = vmatpush3.bf16.msra.mxu0 %v1890_v39 }
 0x739   :  { %1767 = vmatprep.subr.bf16.mxu0 %v1933_v0 }
 0x73c   :  { %1768 = vmatpush3.bf16.msra.mxu0 %v1891_v40 }
 0x73d   :  { %1769 = vmatprep.subr.bf16.mxu0 %v1933_v0 }
 0x740   :  { %1770 = vmatpush3.bf16.msra.mxu0 %v1892_v41 }
 0x741   :  { %1771 = vmatprep.subr.bf16.mxu0 %v1933_v0 }
 0x744   :  { %1772 = vmatpush3.bf16.msra.mxu0 %v1893_v42  ;;  %v1005_v42 = vrot.slane %v1492_v14, %v2043_v36 }
 0x745   :  { %1773 = vmatprep.subr.bf16.mxu0 %v1933_v0 }
 0x748   :  { %1774 = vmatpush3.bf16.msra.mxu0 %v1894_v43 }
 0x749   :  { %1775 = vmatprep.subr.bf16.mxu0 %v1933_v0 }
 0x74c   :  { %1776 = vmatpush3.bf16.msra.mxu0 %v1895_v44 }
 0x74d   :  { %1777 = vmatprep.subr.bf16.mxu0 %v1933_v0 }
 0x750   :  { %1778 = vmatpush3.bf16.msra.mxu0 %v1896_v45  ;;  %v1010_v45 = vrot.slane %v1492_v14, %v2045_v37  ;;  %v1920_v14 = vld [vmem:[%s2381_s2 + $0x178] sm:$0xff]  }
 0x751   :  { %1815 = vmatprep.subr.bf16.mxu0 %v1933_v0 }
 0x806   :  { %v761_v30 = vpop.f32.mrb[8].mxu0 }
 0x807   :  { %v762_v31 = vadd.f32 %v761_v30, %v699_v29  ;;  %v1761_v32 = vpop.f32.mrb[9].mxu0  ;;  %v1908_v29 = vld [vmem:[%s2381_s2 + $0x138] sm:$0xff]   ;;  %v1909_v30 = vld [vmem:[%s2378_s1 + $0xa0] sm:$0xff]  }
 0x808   :  { %v764_v33 = vpop.f32.mrb[10].mxu0 }
 0x809   :  { %767 = vadd.xlane.f32.xlu0 %v762_v31  ;;  %v1762_v34 = vpop.f32.mrb[11].mxu0  ;;  %v770_v35 = vmul.f32 %v762_v31, %v762_v31 }
 0x80b   :  { %771 = vadd.xlane.f32.xlu1 %v770_v35 }
 0x896   :  { %v768_v48 = vpop.xlane.xlu0 %767 }
 0x897   :  { %v769_v49 = vmul.f32 0.0078125, %v768_v48 }
 0x898   :  { %v772_v50 = vpop.xlane.xlu1 %771 }
 0x899   :  { %v774_v51 = vmul.f32 %v769_v49, %v769_v49  ;;  %v773_v52 = vmul.f32 0.0078125, %v772_v50  ;;  %v777_v57 = vsub.f32 %v762_v31, %v769_v49  ;;  %v1910_v31 = vld [vmem:[%s2378_s1 + $0xa8] sm:$0xff]  }
 0x89b   :  { %v775_v53 = vsub.f32 %v773_v52, %v774_v51  ;;  %v1911_v51 = vld [vmem:[%s2378_s1 + $0xb0] sm:$0xff]   ;;  %v1912_v52 = vld [vmem:[%s2378_s1 + $0xb8] sm:$0xff]  }
 0x89d   :  { %v776_v54 = vmax.f32 %v775_v53, 0.0  ;;  %v1522_v53 = vld [vmem:[%s2382_s4 + $0x4] ss:$0 sm:$0xff] }
 0x89f   :  { %v778_v55 = vadd.f32 1e-05, %v776_v54 }
 0x8a1   :  { %1927 = vrsqrt.f32 %v778_v55 }
 0x8ab   :  { %v1928_v58 = vpop.eup %1927 }
 0x8ac   :  { %v780_v60 = vmul.f32 %v1928_v58, %v777_v57 }
 0x8ae   :  { %v785_v61 = vmul.f32 %v784_v56, %v780_v60 }
 0x8b0   :  { %v790_v62 = vadd.f32 %v789_v59, %v785_v61 }
 0x8b2   :  { %v791_v63 = vmax.f32 %v790_v62, 0.0  ;;  %v1531_v62 = vld [vmem:[%s2380_s3 + $0x14] sm:$0x7] }
 0x8b4   :  { %v792_v1 = vpack.c.bf16 %v791_v63, %v791_v63  ;;  %v1141_v63 = vrot.slane %v1531_v62, %v1997_v9  ;;  %v1915_v9 = vld [vmem:[%s2381_s2 + $0x150] sm:$0xff]  }
 0x8b6   :  { %1780 = vmatmul.mubr.bf16.vlgmr.msra.gmra.mrb[12].mxu0 %v792_v1 }
 0x8b7   :  { %1823 = vmatprep.mubr.msk.bf16.mxu0 %vm1934_vm0, %v1933_v0  ;;  %1816 = vmatpush3.bf16.msra.mxu0 %v1909_v30 }
 0x8b8   :  { %1817 = vmatprep.subr.bf16.mxu0 %v1933_v0 }
 0x8bb   :  { %1818 = vmatpush3.bf16.msra.mxu0 %v1910_v31  ;;  %v1561_v31 = vld [vmem:[%s2382_s4 + $0x5] ss:$0 sm:$0xff] }
 0x8bc   :  { %1819 = vmatprep.subr.bf16.mxu0 %v1933_v0 }
 0x8bf   :  { %1820 = vmatpush3.bf16.msra.mxu0 %v1911_v51 }
 0x8c0   :  { %1821 = vmatprep.subr.bf16.mxu0 %v1933_v0 }
 0x8c3   :  { %1822 = vmatpush3.bf16.msra.mxu0 %v1912_v52 }
 0x8c4   :  { %1827 = vmatprep.subr.bf16.mxu0 %v1933_v0 }
 0x989   :  { %v896_v5 = vpop.f32.mrb[12].mxu0 }
 0x98a   :  { %v897_v6 = vadd.f32 %v1483_v4, %v896_v5  ;;  %v1781_v7 = vpop.f32.mrb[13].mxu0 }
 0x98b   :  { %v899_v8 = vpop.f32.mrb[14].mxu0  ;;  %v1913_v7 = vld [vmem:[%s2381_s2 + $0x140] sm:$0xff]  }
 0x98c   :  { %v902_v10 = vadd.f32 %v897_v6, %v2197_v26  ;;  %v1782_v11 = vpop.f32.mrb[15].mxu0  ;;  %v1905_v26 = vld [vmem:[%s2381_s2 + $0x120] sm:$0xff]   ;;  %v1914_v8 = vld [vmem:[%s2381_s2 + $0x148] sm:$0xff]  }
 0x98d   :  { %v1917_v11 = vld [vmem:[%s2381_s2 + $0x160] sm:$0xff]  }
 0x98e   :  { %v2264_v12 = vmul.f32 0.5, %v902_v10  ;;  %v1916_v10 = vld [vmem:[%s2381_s2 + $0x158] sm:$0xff]  }
 0x990   :  { %v907_v13 = vpack.c.bf16 %v2264_v12, %v2264_v12 }
 0x992   :  { %1792 = vmatmul.mubr.msk.bf16.vlgmr.msra.gmra.mrb[16].mxu1 %vm61_vm1, %v907_v13  ;;  %v1919_v13 = vld [vmem:[%s2381_s2 + $0x170] sm:$0xff]  }
 0x993   :  { %1811 = vmatprep.mubr.msk.bf16.mxu1 %vm1934_vm0, %v1933_v0  ;;  %1796 = vmatpush3.bf16.msra.mxu1 %v1901_v22 }
 0x994   :  { %1797 = vmatprep.subr.bf16.mxu1 %v1933_v0 }
 0x997   :  { %1798 = vmatpush3.bf16.msra.mxu1 %v1902_v23  ;;  %v1226_v23 = vrot.slane %v1531_v62, %v2043_v36 }
 0x998   :  { %1799 = vmatprep.subr.bf16.mxu1 %v1933_v0 }
 0x99b   :  { %1800 = vmatpush3.bf16.msra.mxu1 %v1903_v24 }
 0x99c   :  { %1801 = vmatprep.subr.bf16.mxu1 %v1933_v0 }
 0x99f   :  { %1802 = vmatpush3.bf16.msra.mxu1 %v1904_v25 }
 0x9a0   :  { %1803 = vmatprep.subr.bf16.mxu1 %v1933_v0 }
 0x9a3   :  { %1804 = vmatpush3.bf16.msra.mxu1 %v1905_v26  ;;  %v1231_v26 = vrot.slane %v1531_v62, %v2045_v37  ;;  %v1570_v37 = vld [vmem:[%s2382_s4 + $0x6] ss:$0 sm:$0xff] }
 0x9a4   :  { %1805 = vmatprep.subr.bf16.mxu1 %v1933_v0 }
 0x9a7   :  { %1806 = vmatpush3.bf16.msra.mxu1 %v1906_v27 }
 0x9a8   :  { %1807 = vmatprep.subr.bf16.mxu1 %v1933_v0 }
 0x9ab   :  { %1808 = vmatpush3.bf16.msra.mxu1 %v1907_v28 }
 0x9ac   :  { %1809 = vmatprep.subr.bf16.mxu1 %v1933_v0 }
 0x9af   :  { %1810 = vmatpush3.bf16.msra.mxu1 %v1908_v29 }
 0xa65   :  { %v982_v16 = vpop.f32.mrb[16].mxu1 }
 0xa66   :  { %v983_v17 = vadd.f32 %v982_v16, %v920_v15  ;;  %v1793_v18 = vpop.f32.mrb[17].mxu1 }
 0xa67   :  { %v985_v19 = vpop.f32.mrb[18].mxu1 }
 0xa68   :  { %988 = vadd.xlane.f32.xlu0 %v983_v17  ;;  %v1794_v20 = vpop.f32.mrb[19].mxu1  ;;  %v991_v21 = vmul.f32 %v983_v17, %v983_v17 }
 0xa6a   :  { %992 = vadd.xlane.f32.xlu1 %v991_v21 }
 0xaf5   :  { %v989_v32 = vpop.xlane.xlu0 %988 }
 0xaf6   :  { %v990_v33 = vmul.f32 0.0078125, %v989_v32 }
 0xaf7   :  { %v993_v34 = vpop.xlane.xlu1 %992 }
 0xaf8   :  { %v995_v35 = vmul.f32 %v990_v33, %v990_v33  ;;  %v994_v38 = vmul.f32 0.0078125, %v993_v34  ;;  %v998_v43 = vsub.f32 %v983_v17, %v990_v33 }
 0xafa   :  { %v996_v39 = vsub.f32 %v994_v38, %v995_v35 }
 0xafc   :  { %v997_v40 = vmax.f32 %v996_v39, 0.0 }
 0xafe   :  { %v999_v41 = vadd.f32 1e-05, %v997_v40 }
 0xb00   :  { %1929 = vrsqrt.f32 %v999_v41 }
 0xb0a   :  { %v1930_v44 = vpop.eup %1929 }
 0xb0b   :  { %v1001_v46 = vmul.f32 %v1930_v44, %v998_v43 }
 0xb0d   :  { %v1006_v47 = vmul.f32 %v1005_v42, %v1001_v46 }
 0xb0f   :  { %v1011_v48 = vadd.f32 %v1010_v45, %v1006_v47 }
 0xb11   :  { %v1012_v49 = vmax.f32 %v1011_v48, 0.0 }
 0xb13   :  { %v1013_v50 = vpack.c.bf16 %v1012_v49, %v1012_v49 }
 0xb15   :  { %1812 = vmatmul.mubr.bf16.vlgmr.msra.gmra.mrb[20].mxu1 %v1013_v50 }
 0xbe8   :  { %v1117_v54 = vpop.f32.mrb[20].mxu1 }
 0xbe9   :  { %v1118_v55 = vadd.f32 %v1522_v53, %v1117_v54  ;;  %v1813_v56 = vpop.f32.mrb[21].mxu1 }
 0xbea   :  { %v1120_v57 = vpop.f32.mrb[22].mxu1 }
 0xbeb   :  { %v1123_v58 = vadd.f32 %v1118_v55, %v2264_v12  ;;  %v1814_v59 = vpop.f32.mrb[23].mxu1  ;;  %v1918_v12 = vld [vmem:[%s2381_s2 + $0x168] sm:$0xff]  }
 0xbed   :  { %v1124_v60 = vmul.f32 0.5, %v1123_v58 }
 0xbef   :  { %v1128_v61 = vpack.c.bf16 %v1124_v60, %v1124_v60 }
 0xbf1   :  { %1824 = vmatmul.mubr.msk.bf16.vlgmr.msra.gmra.mrb[16].mxu0 %vm61_vm1, %v1128_v61 }
 0xbf2   :  { %1843 = vmatprep.mubr.msk.bf16.mxu0 %vm1934_vm0, %v1933_v0  ;;  %1828 = vmatpush3.bf16.msra.mxu0 %v1913_v7 }
 0xbf3   :  { %1829 = vmatprep.subr.bf16.mxu0 %v1933_v0 }
 0xbf6   :  { %1830 = vmatpush3.bf16.msra.mxu0 %v1914_v8 }
 0xbf7   :  { %1831 = vmatprep.subr.bf16.mxu0 %v1933_v0 }
 0xbfa   :  { %1832 = vmatpush3.bf16.msra.mxu0 %v1915_v9 }
 0xbfb   :  { %1833 = vmatprep.subr.bf16.mxu0 %v1933_v0 }
 0xbfe   :  { %1834 = vmatpush3.bf16.msra.mxu0 %v1916_v10 }
 0xbff   :  { %1835 = vmatprep.subr.bf16.mxu0 %v1933_v0 }
 0xc02   :  { %1836 = vmatpush3.bf16.msra.mxu0 %v1917_v11 }
 0xc03   :  { %1837 = vmatprep.subr.bf16.mxu0 %v1933_v0 }
 0xc06   :  { %1838 = vmatpush3.bf16.msra.mxu0 %v1918_v12 }
 0xc07   :  { %1839 = vmatprep.subr.bf16.mxu0 %v1933_v0 }
 0xc0a   :  { %1840 = vmatpush3.bf16.msra.mxu0 %v1919_v13 }
 0xc0b   :  { %1841 = vmatprep.subr.bf16.mxu0 %v1933_v0 }
 0xc0e   :  { %1842 = vmatpush3.bf16.msra.mxu0 %v1920_v14 }
 0xcc4   :  { %v1203_v1 = vpop.f32.mrb[16].mxu0 }
 0xcc5   :  { %v1204_v2 = vadd.f32 %v1203_v1, %v1141_v63  ;;  %v1825_v3 = vpop.f32.mrb[17].mxu0 }
 0xcc6   :  { %v1206_v4 = vpop.f32.mrb[18].mxu0 }
 0xcc7   :  { %1209 = vadd.xlane.f32.xlu0 %v1204_v2  ;;  %v1826_v5 = vpop.f32.mrb[19].mxu0  ;;  %v1212_v6 = vmul.f32 %v1204_v2, %v1204_v2 }
 0xcc9   :  { %1213 = vadd.xlane.f32.xlu1 %v1212_v6 }
 0xd54   :  { %v1210_v15 = vpop.xlane.xlu0 %1209 }
 0xd55   :  { %v1211_v16 = vmul.f32 0.0078125, %v1210_v15 }
 0xd56   :  { %v1214_v17 = vpop.xlane.xlu1 %1213 }
 0xd57   :  { %v1216_v18 = vmul.f32 %v1211_v16, %v1211_v16  ;;  %v1215_v19 = vmul.f32 0.0078125, %v1214_v17  ;;  %v1219_v24 = vsub.f32 %v1204_v2, %v1211_v16 }
 0xd59   :  { %v1217_v20 = vsub.f32 %v1215_v19, %v1216_v18 }
 0xd5b   :  { %v1218_v21 = vmax.f32 %v1217_v20, 0.0 }
 0xd5d   :  { %v1220_v22 = vadd.f32 1e-05, %v1218_v21 }
 0xd5f   :  { %1931 = vrsqrt.f32 %v1220_v22 }
 0xd69   :  { %v1932_v25 = vpop.eup %1931 }
 0xd6a   :  { %v1222_v27 = vmul.f32 %v1932_v25, %v1219_v24 }
 0xd6c   :  { %v1227_v28 = vmul.f32 %v1226_v23, %v1222_v27 }
 0xd6e   :  { %v1232_v29 = vadd.f32 %v1231_v26, %v1227_v28 }
 0xd70   :  { %v1233_v0 = vmax.f32 %v1232_v29, 0.0 }
 0xd72   :  { %v1234_v30 = vpack.c.bf16 %v1233_v0, %v1233_v0 }
 0xd74   :  { %1844 = vmatmul.mubr.bf16.vlgmr.msra.gmra.mrb[20].mxu0 %v1234_v30 }
 0xe47   :  { %v1338_v32 = vpop.f32.mrb[20].mxu0 }
 0xe48   :  { %v1339_v33 = vadd.f32 %v1561_v31, %v1338_v32  ;;  %v1845_v34 = vpop.f32.mrb[21].mxu0 }
 0xe49   :  { %v1341_v35 = vpop.f32.mrb[22].mxu0 }
 0xe4a   :  { %v1344_v38 = vadd.f32 %v1339_v33, %v1124_v60  ;;  %v1846_v36 = vpop.f32.mrb[23].mxu0 }
 0xe4c   :  { %v1345_v39 = vmul.f32 0.5, %v1344_v38 }
 0xe4e   :  { %v1351_v40 = vmul.f32 %v1570_v37, %v1345_v39 }
 0xe50   :  { %v1352_v41 = vsel %vm61_vm1, %v1351_v40, 0.0 }
 0xe51   :  { %1353 = vadd.xlane.f32.xlu0 %v1352_v41 }
 0xede   :  { %v1354_v42 = vpop.xlane.xlu0 %1353 }
 0xedf   :  { %1356 = vst.msk [vmem:[%s2383_s5] sm:$0xff] %vm1355_vm2, %v1354_v42 }

</bundles_post_ra>
